<compile_context>
chip_gen: v6e
topology: v6e:2x2x1
jax: 0.10.0
libtpu: 0.0.40
codegen_flags: <defaults>
</compile_context>

<pallas_src>
import jax
import jax.numpy as jnp
from jax.experimental import pallas as pl
from jax.experimental.pallas import tpu as pltpu
import numpy as np

LANE = 128


def _make_encoder_cnn_kernel(L, Hp):
    def kernel(x_ref, wcat_ref, bc_ref, wfc_ref, bfc_ref, o_ref):
        # x_ref   : (M, D)    caller dtype (f32); cast to bf16 in-kernel
        # wcat_ref: (D, 3*Hp) bf16, [W0 | W1 | W2], each tap padded to Hp lanes
        # bc_ref  : (1, Hp)   f32 conv bias (zero-padded)
        # wfc_ref : (Hp, Op)  bf16 fc weight (zero-padded)
        # bfc_ref : (1, Op)   f32 fc bias (zero-padded)
        # o_ref   : (M, Op)   f32, lane-dense (Op multiple of 128)
        x = x_ref[...].astype(jnp.bfloat16)
        M = x.shape[0]

        # All three conv taps in ONE MXU pass.
        y = jnp.dot(x, wcat_ref[...], preferred_element_type=jnp.float32)  # (M, 3Hp)
        # Tap slices land on 128-lane vreg boundaries (Hp % 128 == 0).
        y0 = y[:, 0 * Hp:1 * Hp]   # contributes x[t-1]
        y1 = y[:, 1 * Hp:2 * Hp]   # contributes x[t]
        y2 = y[:, 2 * Hp:3 * Hp]   # contributes x[t+1]

        # Sequence-boundary masks: one (M, 1) column of VPU work.
        rm = jax.lax.broadcasted_iota(jnp.int32, (M, 1), 0) % L
        not_first = rm != 0          # t == 0     -> zero the t-1 tap
        not_last = rm != (L - 1)     # t == L-1   -> zero the t+1 tap

        # Align taps along the sequence (sublane) axis; zeros at boundaries
        # reproduce Conv2d padding=(1, 0).  Rolls go to the XLU slot.
        y0s = jnp.where(not_first, pltpu.roll(y0, shift=1, axis=0), 0.0)
        y2s = jnp.where(not_last, pltpu.roll(y2, shift=M - 1, axis=0), 0.0)

        h = jnp.maximum(y0s + y1 + y2s + bc_ref[...], 0.0)                 # (M, Hp) f32

        # Dropout (eval mode) is identity; fused fc + relu, one lane-dense store.
        out = jnp.dot(h.astype(jnp.bfloat16), wfc_ref[...],
                      preferred_element_type=jnp.float32) + bfc_ref[...]
        o_ref[...] = jnp.maximum(out, 0.0)

    return kernel


def encoder_cnn_forward(x, w_conv, b_conv, w_fc, b_fc, rows_target=1024):
    """x: (B, L, D); w_conv: (H, 3, D); b_conv: (H,); w_fc: (O, H); b_fc: (O,)."""
    B, L, D = x.shape
    H = w_conv.shape[0]
    O = w_fc.shape[0]

    Hp = pl.cdiv(H, LANE) * LANE     # per-tap block width, lane-tile aligned
    Op = pl.cdiv(O, LANE) * LANE     # lane-dense output width

    # ---- row-tile (M = bpt * L) selection ---------------------------------
    itemsize = int(jnp.dtype(x.dtype).itemsize)
    # Crude per-row VMEM bytes: double-buffered in/out tiles + f32 intermediates.
    per_row = 2 * D * itemsize + 2 * Op * 4 + (3 * Hp + 2 * Hp) * 4
    budget_rows = max(L, (24 * 1024 * 1024) // max(per_row, 1))
    rows_target = min(rows_target, budget_rows)

    bpt = min(B, max(1, rows_target // max(L, 1)))
    if bpt >= B and B > 1:
        bpt = -(-B // 2)             # keep >= 2 grid steps: both v7x TCs get work
    # Prefer M a multiple of 16 (bf16 sublane packing) without collapsing the grid.
    while (bpt * L) % 16 != 0 and bpt < B and -(-B // (bpt + 1)) >= 2:
        bpt += 1
    # Hard requirement: block rows divisible by 8 unless the block is the full array.
    while bpt < B and (bpt * L) % 8 != 0:
        bpt += 1
    n_tiles = -(-B // bpt)
    B_pad = n_tiles * bpt
    M = bpt * L

    # ---- operands ----------------------------------------------------------
    # Activations stay in the caller's dtype (no extra HBM round trip); the
    # contiguous reshape is free, and padding only happens when bpt doesn't
    # divide B (padded rows are discarded by the final slice).
    xf = x.reshape(B * L, D)
    if B_pad > B:
        xf = jnp.pad(xf, ((0, (B_pad - B) * L), (0, 0)))

    # Fused conv weight [W0 | W1 | W2], each tap zero-padded to Hp lanes.
    wcat = jnp.zeros((D, 3 * Hp), jnp.bfloat16)
    for k in range(3):
        wcat = wcat.at[:, k * Hp:k * Hp + H].set(w_conv[:, k, :].T.astype(jnp.bfloat16))
    bc = jnp.zeros((1, Hp), jnp.float32).at[:, :H].set(b_conv.astype(jnp.float32))
    wfc = jnp.zeros((Hp, Op), jnp.bfloat16).at[:H, :O].set(w_fc.T.astype(jnp.bfloat16))
    bfc = jnp.zeros((1, Op), jnp.float32).at[:, :O].set(b_fc.astype(jnp.float32))

    # Explicit VMEM limit (v5e scoped default is only 16 MiB); capped well
    # below v7x's 64 MiB physical VMEM.
    vmem_est = (2 * M * D * itemsize            # input tile (double-buffered)
                + 2 * M * Op * 4                # output tile (double-buffered)
                + M * (3 * Hp + 2 * Hp) * 4     # f32 intermediates / spill headroom
                + wcat.size * 2 + wfc.size * 2 + (bc.size + bfc.size) * 4)
    vmem_limit = int(min(48 * 1024 * 1024, max(16 * 1024 * 1024, 2 * vmem_est)))

    params = pltpu.CompilerParams(
        dimension_semantics=("parallel",),
        vmem_limit_bytes=vmem_limit)

    def call(single_buffer_weights):
        def inv_spec(shape):
            # Grid-invariant operand: single-buffer (constant index_map ->
            # no overlap to gain, halves its VMEM footprint).
            if single_buffer_weights:
                return pl.BlockSpec(shape, lambda g: (0, 0),
                                    pipeline_mode=pl.Buffered(1))
            return pl.BlockSpec(shape, lambda g: (0, 0))

        return pl.pallas_call(
            _make_encoder_cnn_kernel(L, Hp),
            out_shape=jax.ShapeDtypeStruct((B_pad * L, Op), jnp.float32),
            grid=(n_tiles,),
            in_specs=[
                pl.BlockSpec((M, D), lambda g: (g, 0)),    # activations tile
                inv_spec((D, 3 * Hp)),                     # fused conv weight
                inv_spec((1, Hp)),                         # conv bias
                inv_spec((Hp, Op)),                        # fc weight
                inv_spec((1, Op)),                         # fc bias
            ],
            out_specs=pl.BlockSpec((M, Op), lambda g: (g, 0)),
            compiler_params=params,
        )(xf, wcat, bc, wfc, bfc)

    try:
        out_flat = call(True)
    except Exception:
        # pipeline_mode=pl.Buffered(1) unsupported on this JAX version/path:
        # fall back to default double-buffered weights (identical numerics).
        out_flat = call(False)

    return out_flat[:B * L, :O].reshape(B, L, O)


def reference_forward(x, w_conv, b_conv, w_fc, b_fc):
    """Pure-JAX reference matching the PyTorch cnn branch, with the same bf16
    quantization of activations/weights (f32 accumulation) as the kernel."""
    B, L, D = x.shape
    xb = x.astype(jnp.bfloat16).astype(jnp.float32)
    wcb = w_conv.astype(jnp.bfloat16).astype(jnp.float32)
    wfb = w_fc.astype(jnp.bfloat16).astype(jnp.float32)

    xpad = jnp.pad(xb, ((0, 0), (1, 1), (0, 0)))
    h = sum(
        jnp.einsum("bld,cd->blc", xpad[:, k:k + L, :], wcb[:, k, :])
        for k in range(3)
    ) + b_conv
    h = jnp.maximum(h, 0.0)
    hb = h.astype(jnp.bfloat16).astype(jnp.float32)
    out = jnp.maximum(hb @ wfb.T + b_fc, 0.0)
    return out


if __name__ == "__main__":
    # Small shapes consistent with the module: batch=2, seq=8, input_size=32,
    # hidden_size=16, out_size=8.
    B, L, D, H, O = 2, 8, 32, 16, 8

    key = jax.random.PRNGKey(0)
    k_x, k_wc, k_wfc, k_bfc = jax.random.split(key, 4)

    x = jax.random.normal(k_x, (B, L, D), dtype=jnp.float32)

    # Conv2d(1, H, (3, D)) weight, xavier_uniform_: bound = sqrt(6/(fan_in+fan_out)),
    # fan_in = 1*3*D, fan_out = H*3*D.  Stored as (H, 3, D) (in_channels=1 squeezed).
    xav_bound = float(np.sqrt(6.0 / (1 * 3 * D + H * 3 * D)))
    w_conv = jax.random.uniform(k_wc, (H, 3, D), jnp.float32, -xav_bound, xav_bound)
    b_conv = jnp.zeros((H,), jnp.float32)            # nn.init.constant_(bias, 0.0)

    # fc: Linear(H, O), weight ~ U(-0.5, 0.5), bias ~ U(-0.1, 0.1)
    w_fc = jax.random.uniform(k_wfc, (O, H), jnp.float32, -0.5, 0.5)
    b_fc = jax.random.uniform(k_bfc, (O,), jnp.float32, -0.1, 0.1)

    out = encoder_cnn_forward(x, w_conv, b_conv, w_fc, b_fc)
    out = jax.block_until_ready(out)

    ref = reference_forward(x, w_conv, b_conv, w_fc, b_fc)
    np.testing.assert_allclose(np.asarray(out), np.asarray(ref), rtol=1e-4, atol=1e-4)

    print("KERNEL_OK")
</pallas_src>

<mosaic_0001>
module attributes {stable_mosaic.version = 11 : i64} {
  func.func @kernel(%arg0: i32, %arg1: memref<8x32xf32, #tpu.memory_space<vmem>>, %arg2: memref<32x384xbf16, #tpu.memory_space<vmem>>, %arg3: memref<1x128xf32, #tpu.memory_space<vmem>>, %arg4: memref<128x128xbf16, #tpu.memory_space<vmem>>, %arg5: memref<1x128xf32, #tpu.memory_space<vmem>>, %arg6: memref<8x128xf32, #tpu.memory_space<vmem>>) attributes {dimension_semantics = [#tpu.dimension_semantics<parallel>], iteration_bounds = array<i64: 2>, scalar_prefetch = 0 : i64, scratch_operands = 0 : i64, tpu.core_type = #tpu.core_type<tc>, window_params = [{transform_indices = @transform_0, window_bounds = array<i64: 8, 32>}, {pipeline_mode = #tpu.pipeline_mode<synchronous>, transform_indices = @transform_1, window_bounds = array<i64: 32, 384>}, {pipeline_mode = #tpu.pipeline_mode<synchronous>, transform_indices = @transform_2, window_bounds = array<i64: 1, 128>}, {pipeline_mode = #tpu.pipeline_mode<synchronous>, transform_indices = @transform_3, window_bounds = array<i64: 128, 128>}, {pipeline_mode = #tpu.pipeline_mode<synchronous>, transform_indices = @transform_4, window_bounds = array<i64: 1, 128>}, {transform_indices = @transform_5, window_bounds = array<i64: 8, 128>}]} {
    %c0 = arith.constant 0 : index
    %c0_0 = arith.constant 0 : index
    %0 = vector.load %arg1[%c0, %c0_0] : memref<8x32xf32, #tpu.memory_space<vmem>>, vector<8x32xf32>
    %1 = arith.truncf %0 : vector<8x32xf32> to vector<8x32xbf16>
    %c0_1 = arith.constant 0 : index
    %c0_2 = arith.constant 0 : index
    %2 = vector.load %arg2[%c0_1, %c0_2] : memref<32x384xbf16, #tpu.memory_space<vmem>>, vector<32x384xbf16>
    %cst = arith.constant dense<0.000000e+00> : vector<8x384xf32>
    %3 = tpu.matmul %1, %2, %cst {dimension_numbers = #tpu.dot_dimension_numbers<[1], [0], [0], [1], [0, 0, 1, 1], [], []>} : vector<8x32xbf16>, vector<32x384xbf16>, vector<8x384xf32> -> vector<8x384xf32>
    %4 = vector.extract_strided_slice %3 {offsets = [0, 0], sizes = [8, 128], strides = [1, 1]} : vector<8x384xf32> to vector<8x128xf32>
    %5 = vector.extract_strided_slice %3 {offsets = [0, 128], sizes = [8, 128], strides = [1, 1]} : vector<8x384xf32> to vector<8x128xf32>
    %6 = vector.extract_strided_slice %3 {offsets = [0, 256], sizes = [8, 128], strides = [1, 1]} : vector<8x384xf32> to vector<8x128xf32>
    %7 = tpu.iota {dimensions = array<i32: 0>} : vector<8x1xi32>
    %c8_i32 = arith.constant 8 : i32
    %c0_i32 = arith.constant 0 : i32
    %8 = arith.cmpi eq, %c8_i32, %c0_i32 : i32
    %c1_i32 = arith.constant 1 : i32
    %9 = arith.select %8, %c1_i32, %c8_i32 : i32
    %10 = vector.broadcast %9 : i32 to vector<8x1xi32>
    %11 = arith.remsi %7, %10 : vector<8x1xi32>
    %c0_i32_3 = arith.constant 0 : i32
    %12 = vector.broadcast %c0_i32_3 : i32 to vector<8x1xi32>
    %13 = arith.cmpi ne, %11, %12 : vector<8x1xi32>
    %c0_i32_4 = arith.constant 0 : i32
    %14 = vector.broadcast %c0_i32_4 : i32 to vector<8x1xi32>
    %15 = arith.cmpi slt, %11, %14 : vector<8x1xi32>
    %c0_i32_5 = arith.constant 0 : i32
    %16 = arith.cmpi slt, %9, %c0_i32_5 : i32
    %17 = vector.broadcast %16 : i1 to vector<8x1xi1>
    %18 = vector.broadcast %17 : vector<8x1xi1> to vector<8x1xi1>
    %19 = arith.xori %15, %18 : vector<8x1xi1>
    %20 = arith.andi %19, %13 : vector<8x1xi1>
    %21 = vector.broadcast %9 : i32 to vector<8x1xi32>
    %22 = arith.addi %11, %21 : vector<8x1xi32>
    %23 = arith.select %20, %22, %11 : vector<8x1xi1>, vector<8x1xi32>
    %c0_i32_6 = arith.constant 0 : i32
    %24 = vector.broadcast %c0_i32_6 : i32 to vector<8x1xi32>
    %25 = arith.cmpi ne, %23, %24 : vector<8x1xi32>
    %c7_i32 = arith.constant 7 : i32
    %26 = vector.broadcast %c7_i32 : i32 to vector<8x1xi32>
    %27 = arith.cmpi ne, %23, %26 : vector<8x1xi32>
    %c1_i32_7 = arith.constant 1 : i32
    %28 = tpu.dynamic_rotate %4 by %c1_i32_7 dim 0 : vector<8x128xf32>, i32 -> vector<8x128xf32>
    %cst_8 = arith.constant 0.000000e+00 : f32
    %29 = vector.shape_cast %25 : vector<8x1xi1> to vector<8x1xi1>
    %30 = vector.broadcast %29 : vector<8x1xi1> to vector<8x128xi1>
    %31 = vector.broadcast %cst_8 : f32 to vector<8x128xf32>
    %32 = arith.select %30, %28, %31 : vector<8x128xi1>, vector<8x128xf32>
    %c7_i32_9 = arith.constant 7 : i32
    %33 = tpu.dynamic_rotate %6 by %c7_i32_9 dim 0 : vector<8x128xf32>, i32 -> vector<8x128xf32>
    %cst_10 = arith.constant 0.000000e+00 : f32
    %34 = vector.shape_cast %27 : vector<8x1xi1> to vector<8x1xi1>
    %35 = vector.broadcast %34 : vector<8x1xi1> to vector<8x128xi1>
    %36 = vector.broadcast %cst_10 : f32 to vector<8x128xf32>
    %37 = arith.select %35, %33, %36 : vector<8x128xi1>, vector<8x128xf32>
    %38 = arith.addf %32, %5 : vector<8x128xf32>
    %39 = arith.addf %38, %37 : vector<8x128xf32>
    %c0_11 = arith.constant 0 : index
    %c0_12 = arith.constant 0 : index
    %40 = vector.load %arg3[%c0_11, %c0_12] : memref<1x128xf32, #tpu.memory_space<vmem>>, vector<1x128xf32>
    %41 = vector.broadcast %40 : vector<1x128xf32> to vector<8x128xf32>
    %42 = arith.addf %39, %41 : vector<8x128xf32>
    %cst_13 = arith.constant 0.000000e+00 : f32
    %43 = vector.broadcast %cst_13 : f32 to vector<8x128xf32>
    %44 = arith.maximumf %42, %43 : vector<8x128xf32>
    %45 = arith.truncf %44 : vector<8x128xf32> to vector<8x128xbf16>
    %c0_14 = arith.constant 0 : index
    %c0_15 = arith.constant 0 : index
    %46 = vector.load %arg4[%c0_14, %c0_15] : memref<128x128xbf16, #tpu.memory_space<vmem>>, vector<128x128xbf16>
    %cst_16 = arith.constant dense<0.000000e+00> : vector<8x128xf32>
    %47 = tpu.matmul %45, %46, %cst_16 {dimension_numbers = #tpu.dot_dimension_numbers<[1], [0], [0], [1], [0, 0, 1, 1], [], []>} : vector<8x128xbf16>, vector<128x128xbf16>, vector<8x128xf32> -> vector<8x128xf32>
    %c0_17 = arith.constant 0 : index
    %c0_18 = arith.constant 0 : index
    %48 = vector.load %arg5[%c0_17, %c0_18] : memref<1x128xf32, #tpu.memory_space<vmem>>, vector<1x128xf32>
    %49 = vector.broadcast %48 : vector<1x128xf32> to vector<8x128xf32>
    %50 = arith.addf %47, %49 : vector<8x128xf32>
    %cst_19 = arith.constant 0.000000e+00 : f32
    %51 = vector.broadcast %cst_19 : f32 to vector<8x128xf32>
    %52 = arith.maximumf %50, %51 : vector<8x128xf32>
    %c0_20 = arith.constant 0 : index
    %c0_21 = arith.constant 0 : index
    %53 = vector.load %arg6[%c0_20, %c0_21] : memref<8x128xf32, #tpu.memory_space<vmem>>, vector<8x128xf32>
    tpu.vector_store %arg6[%c0_20, %c0_21], %52 {strides = array<i32>} : memref<8x128xf32, #tpu.memory_space<vmem>>, vector<8x128xf32>,
    return
  }
  func.func @transform_0(%arg0: i32) -> (i32, i32) {
    %c0_i32 = arith.constant 0 : i32
    %c0_i32_0 = arith.constant 0 : i32
    return %arg0, %c0_i32 : i32, i32
  }
  func.func @transform_1(%arg0: i32) -> (i32, i32) {
    %c0_i32 = arith.constant 0 : i32
    %c0_i32_0 = arith.constant 0 : i32
    %c0_i32_1 = arith.constant 0 : i32
    return %c0_i32, %c0_i32_0 : i32, i32
  }
  func.func @transform_2(%arg0: i32) -> (i32, i32) {
    %c0_i32 = arith.constant 0 : i32
    %c0_i32_0 = arith.constant 0 : i32
    %c0_i32_1 = arith.constant 0 : i32
    return %c0_i32, %c0_i32_0 : i32, i32
  }
  func.func @transform_3(%arg0: i32) -> (i32, i32) {
    %c0_i32 = arith.constant 0 : i32
    %c0_i32_0 = arith.constant 0 : i32
    %c0_i32_1 = arith.constant 0 : i32
    return %c0_i32, %c0_i32_0 : i32, i32
  }
  func.func @transform_4(%arg0: i32) -> (i32, i32) {
    %c0_i32 = arith.constant 0 : i32
    %c0_i32_0 = arith.constant 0 : i32
    %c0_i32_1 = arith.constant 0 : i32
    return %c0_i32, %c0_i32_0 : i32, i32
  }
  func.func @transform_5(%arg0: i32) -> (i32, i32) {
    %c0_i32 = arith.constant 0 : i32
    %c0_i32_0 = arith.constant 0 : i32
    return %arg0, %c0_i32 : i32, i32
  }
}

module attributes {stable_mosaic.version = 11 : i64} {
  func.func @kernel(%arg0: i32, %arg1: memref<8x32xf32, #tpu.memory_space<vmem>>, %arg2: memref<32x384xbf16, #tpu.memory_space<vmem>>, %arg3: memref<1x128xf32, #tpu.memory_space<vmem>>, %arg4: memref<128x128xbf16, #tpu.memory_space<vmem>>, %arg5: memref<1x128xf32, #tpu.memory_space<vmem>>, %arg6: memref<8x128xf32, #tpu.memory_space<vmem>>) attributes {dimension_semantics = [#tpu.dimension_semantics<parallel>], iteration_bounds = array<i64: 2>, scalar_prefetch = 0 : i64, scratch_operands = 0 : i64, tpu.core_type = #tpu.core_type<tc>, window_params = [{transform_indices = @transform_0, window_bounds = array<i64: 8, 32>}, {pipeline_mode = #tpu.pipeline_mode<synchronous>, transform_indices = @transform_1, window_bounds = array<i64: 32, 384>}, {pipeline_mode = #tpu.pipeline_mode<synchronous>, transform_indices = @transform_2, window_bounds = array<i64: 1, 128>}, {pipeline_mode = #tpu.pipeline_mode<synchronous>, transform_indices = @transform_3, window_bounds = array<i64: 128, 128>}, {pipeline_mode = #tpu.pipeline_mode<synchronous>, transform_indices = @transform_4, window_bounds = array<i64: 1, 128>}, {transform_indices = @transform_5, window_bounds = array<i64: 8, 128>}]} {
    %c0 = arith.constant 0 : index
    %c0_0 = arith.constant 0 : index
    %0 = vector.load %arg1[%c0, %c0_0] : memref<8x32xf32, #tpu.memory_space<vmem>>, vector<8x32xf32>
    %1 = arith.truncf %0 : vector<8x32xf32> to vector<8x32xbf16>
    %c0_1 = arith.constant 0 : index
    %c0_2 = arith.constant 0 : index
    %2 = vector.load %arg2[%c0_1, %c0_2] : memref<32x384xbf16, #tpu.memory_space<vmem>>, vector<32x384xbf16>
    %cst = arith.constant dense<0.000000e+00> : vector<8x384xf32>
    %3 = tpu.matmul %1, %2, %cst {dimension_numbers = #tpu.dot_dimension_numbers<[1], [0], [0], [1], [0, 0, 1, 1], [], []>} : vector<8x32xbf16>, vector<32x384xbf16>, vector<8x384xf32> -> vector<8x384xf32>
    %4 = vector.extract_strided_slice %3 {offsets = [0, 0], sizes = [8, 128], strides = [1, 1]} : vector<8x384xf32> to vector<8x128xf32>
    %5 = vector.extract_strided_slice %3 {offsets = [0, 128], sizes = [8, 128], strides = [1, 1]} : vector<8x384xf32> to vector<8x128xf32>
    %6 = vector.extract_strided_slice %3 {offsets = [0, 256], sizes = [8, 128], strides = [1, 1]} : vector<8x384xf32> to vector<8x128xf32>
    %7 = tpu.iota {dimensions = array<i32: 0>} : vector<8x1xi32>
    %c8_i32 = arith.constant 8 : i32
    %c0_i32 = arith.constant 0 : i32
    %8 = arith.cmpi eq, %c8_i32, %c0_i32 : i32
    %c1_i32 = arith.constant 1 : i32
    %9 = arith.select %8, %c1_i32, %c8_i32 : i32
    %10 = vector.broadcast %9 : i32 to vector<8x1xi32>
    %11 = arith.remsi %7, %10 : vector<8x1xi32>
    %c0_i32_3 = arith.constant 0 : i32
    %12 = vector.broadcast %c0_i32_3 : i32 to vector<8x1xi32>
    %13 = arith.cmpi ne, %11, %12 : vector<8x1xi32>
    %c0_i32_4 = arith.constant 0 : i32
    %14 = vector.broadcast %c0_i32_4 : i32 to vector<8x1xi32>
    %15 = arith.cmpi slt, %11, %14 : vector<8x1xi32>
    %c0_i32_5 = arith.constant 0 : i32
    %16 = arith.cmpi slt, %9, %c0_i32_5 : i32
    %17 = vector.broadcast %16 : i1 to vector<8x1xi1>
    %18 = vector.broadcast %17 : vector<8x1xi1> to vector<8x1xi1>
    %19 = arith.xori %15, %18 : vector<8x1xi1>
    %20 = arith.andi %19, %13 : vector<8x1xi1>
    %21 = vector.broadcast %9 : i32 to vector<8x1xi32>
    %22 = arith.addi %11, %21 : vector<8x1xi32>
    %23 = arith.select %20, %22, %11 : vector<8x1xi1>, vector<8x1xi32>
    %c0_i32_6 = arith.constant 0 : i32
    %24 = vector.broadcast %c0_i32_6 : i32 to vector<8x1xi32>
    %25 = arith.cmpi ne, %23, %24 : vector<8x1xi32>
    %c7_i32 = arith.constant 7 : i32
    %26 = vector.broadcast %c7_i32 : i32 to vector<8x1xi32>
    %27 = arith.cmpi ne, %23, %26 : vector<8x1xi32>
    %c1_i32_7 = arith.constant 1 : i32
    %28 = tpu.dynamic_rotate %4 by %c1_i32_7 dim 0 : vector<8x128xf32>, i32 -> vector<8x128xf32>
    %cst_8 = arith.constant 0.000000e+00 : f32
    %29 = vector.shape_cast %25 : vector<8x1xi1> to vector<8x1xi1>
    %30 = vector.broadcast %29 : vector<8x1xi1> to vector<8x128xi1>
    %31 = vector.broadcast %cst_8 : f32 to vector<8x128xf32>
    %32 = arith.select %30, %28, %31 : vector<8x128xi1>, vector<8x128xf32>
    %c7_i32_9 = arith.constant 7 : i32
    %33 = tpu.dynamic_rotate %6 by %c7_i32_9 dim 0 : vector<8x128xf32>, i32 -> vector<8x128xf32>
    %cst_10 = arith.constant 0.000000e+00 : f32
    %34 = vector.shape_cast %27 : vector<8x1xi1> to vector<8x1xi1>
    %35 = vector.broadcast %34 : vector<8x1xi1> to vector<8x128xi1>
    %36 = vector.broadcast %cst_10 : f32 to vector<8x128xf32>
    %37 = arith.select %35, %33, %36 : vector<8x128xi1>, vector<8x128xf32>
    %38 = arith.addf %32, %5 : vector<8x128xf32>
    %39 = arith.addf %38, %37 : vector<8x128xf32>
    %c0_11 = arith.constant 0 : index
    %c0_12 = arith.constant 0 : index
    %40 = vector.load %arg3[%c0_11, %c0_12] : memref<1x128xf32, #tpu.memory_space<vmem>>, vector<1x128xf32>
    %41 = vector.broadcast %40 : vector<1x128xf32> to vector<8x128xf32>
    %42 = arith.addf %39, %41 : vector<8x128xf32>
    %cst_13 = arith.constant 0.000000e+00 : f32
    %43 = vector.broadcast %cst_13 : f32 to vector<8x128xf32>
    %44 = arith.maximumf %42, %43 : vector<8x128xf32>
    %45 = arith.truncf %44 : vector<8x128xf32> to vector<8x128xbf16>
    %c0_14 = arith.constant 0 : index
    %c0_15 = arith.constant 0 : index
    %46 = vector.load %arg4[%c0_14, %c0_15] : memref<128x128xbf16, #tpu.memory_space<vmem>>, vector<128x128xbf16>
    %cst_16 = arith.constant dense<0.000000e+00> : vector<8x128xf32>
    %47 = tpu.matmul %45, %46, %cst_16 {dimension_numbers = #tpu.dot_dimension_numbers<[1], [0], [0], [1], [0, 0, 1, 1], [], []>} : vector<8x128xbf16>, vector<128x128xbf16>, vector<8x128xf32> -> vector<8x128xf32>
    %c0_17 = arith.constant 0 : index
    %c0_18 = arith.constant 0 : index
    %48 = vector.load %arg5[%c0_17, %c0_18] : memref<1x128xf32, #tpu.memory_space<vmem>>, vector<1x128xf32>
    %49 = vector.broadcast %48 : vector<1x128xf32> to vector<8x128xf32>
    %50 = arith.addf %47, %49 : vector<8x128xf32>
    %cst_19 = arith.constant 0.000000e+00 : f32
    %51 = vector.broadcast %cst_19 : f32 to vector<8x128xf32>
    %52 = arith.maximumf %50, %51 : vector<8x128xf32>
    %c0_20 = arith.constant 0 : index
    %c0_21 = arith.constant 0 : index
    %53 = vector.load %arg6[%c0_20, %c0_21] : memref<8x128xf32, #tpu.memory_space<vmem>>, vector<8x128xf32>
    tpu.vector_store %arg6[%c0_20, %c0_21], %52 {strides = array<i32>} : memref<8x128xf32, #tpu.memory_space<vmem>>, vector<8x128xf32>,
    return
  }
  func.func @transform_0(%arg0: i32) -> (i32, i32) {
    %c0_i32 = arith.constant 0 : i32
    %c0_i32_0 = arith.constant 0 : i32
    return %arg0, %c0_i32 : i32, i32
  }
  func.func @transform_1(%arg0: i32) -> (i32, i32) {
    %c0_i32 = arith.constant 0 : i32
    %c0_i32_0 = arith.constant 0 : i32
    %c0_i32_1 = arith.constant 0 : i32
    return %c0_i32, %c0_i32_0 : i32, i32
  }
  func.func @transform_2(%arg0: i32) -> (i32, i32) {
    %c0_i32 = arith.constant 0 : i32
    %c0_i32_0 = arith.constant 0 : i32
    %c0_i32_1 = arith.constant 0 : i32
    return %c0_i32, %c0_i32_0 : i32, i32
  }
  func.func @transform_3(%arg0: i32) -> (i32, i32) {
    %c0_i32 = arith.constant 0 : i32
    %c0_i32_0 = arith.constant 0 : i32
    %c0_i32_1 = arith.constant 0 : i32
    return %c0_i32, %c0_i32_0 : i32, i32
  }
  func.func @transform_4(%arg0: i32) -> (i32, i32) {
    %c0_i32 = arith.constant 0 : i32
    %c0_i32_0 = arith.constant 0 : i32
    %c0_i32_1 = arith.constant 0 : i32
    return %c0_i32, %c0_i32_0 : i32, i32
  }
  func.func @transform_5(%arg0: i32) -> (i32, i32) {
    %c0_i32 = arith.constant 0 : i32
    %c0_i32_0 = arith.constant 0 : i32
    return %arg0, %c0_i32 : i32, i32
  }
}

</mosaic_0001>

<bundles_post_ra>
// kernel: tpu_custom_call.1
= control target key start
LH: loop header
LB: loop body
LE: loop exit
PB: predicated region body
PF: predicated region fallthrough
CT: control target
= control target key end

     0   :  { %10 = vsyncpa [#allocation3], 0  ;;  %s1195_s0 = inlined_call_operand.hbm [shape: f32[16,32], index: 0, kind: input, shape index: {}]   ;;  %s1196_s1 = inlined_call_operand.hbm [shape: bf16[32,384], index: 1, kind: input, shape index: {}]   ;;  %s1197_s2 = inlined_call_operand.vmem [shape: f32[1,128], index: 2, kind: input, shape index: {}]   ;;  %s1198_s3 = inlined_call_operand.hbm [shape: bf16[128,128], index: 3, kind: input, shape index: {}]   ;;  %s1199_s4 = inlined_call_operand.vmem [shape: f32[1,128], index: 4, kind: input, shape index: {}]   ;;  %s1200_s5 = inlined_call_operand.hbm [shape: f32[16,128], index: 5, kind: output, shape index: {}]  }
   0x1   :  { %12 = vsyncpa [#allocation3 + $0x1], 0 }
   0x2   :  { %13 = vsyncpa [#allocation6], 0 }
   0x3   :  { %14 = vsyncpa [#allocation4], 0 }
   0x4   :  { %16 = vsyncpa [#allocation4 + $0x1], 0  ;;  %s1004_s18 = smov 0   ;;  %s1006_s19 = smov 0  }
   0x5   :  { %s1008_s20 = smov 0   ;;  %s1010_s21 = smov 0  }
   0x6 LB: > { %s1025_s22 = sadd.s32 4294967295, %s961_s21   ;;  %s649_s23 = sadd.s32 4294967294, %s961_s21   ;;  %s961_s21 = sphi %s1010_s21, %s1222_s21   ;;  %s957_s20 = sphi %s1008_s20, %s1221_s20   ;;  %s953_s19 = sphi %s1006_s19, %s1220_s19   ;;  %s949_s18 = sphi %s1004_s18, %s1219_s18  }
   0x7   : > { %p42_p0 = scmp.ne.s32.totalorder %s953_s19, %s949_s18  ;;  %p1201_p1 = scmp.eq.s32.totalorder %s1025_s22, 0 }
   0x8   : > { %p156_p3 = scmp.eq.s32.totalorder %s649_s23, 1  ;;  %p650_p5 = scmp.ge.s32.totalorder %s961_s21, 1 }
   0x9   : > { %p1034_p4 = por %p1201_p1, %p42_p0  ;;  %p163_p7 = scmp.lt.s32.totalorder %s961_s21, 3 }
   0xa   : > { %p1039_p6 = por %p156_p3, %p42_p0  ;;  %s963_s27 = smov [#allocation5]  }
   0xb   : > { %s1205_s24 = scalar_select %p1034_p4, 1, 0 }
   0xc   : > { %s1206_s25 = scalar_select %p1039_p6, 1, 0 }
   0xd   : > { %p1044_p8 = pnand %p650_p5, %p163_p7  ;;  %s175_s28 = sshll.u32 %s963_s27, 4  ;;  %s176_s28 = int_to_ptr.vmem [resolvable:$true] %s175_s28 }
   0xe   : > { %s964_s30 = smov [#allocation7]   ;;  %s824_s7 = scalar_lea.vmem %s176_s28, 768 }
   0xf   : > { %s1207_s26 = scalar_select %p1044_p8, 1, 0 }
  0x10   : > { %p735_p9 = pneg %p1044_p8  ;;  %s191_s6 = sshll.u32 %s964_s30, 4  ;;  %s192_s6 = int_to_ptr.vmem [resolvable:$true] %s191_s6 }
  0x11   : > { %p825_p13 = scmp.ne.s32.totalorder %s176_s28, %s824_s7  ;;  %p832_p5 = scmp.lt.s32.totalorder %s176_s28, %s176_s28 }
  0x12   : > { %p1053_p11 = pnand %p735_p9, %p1201_p1  ;;  %p833_p7 = scmp.lt.s32.totalorder %s824_s7, %s824_s7 }
  0x14   : > { %p815_p12 = pneg %p1053_p11  ;;  %p834_p10 = por %p833_p7, %p832_p5 }
  0x16   : > { %p827_p0 = pnand %p825_p13, %p815_p12 }
  0x18   : > { %p828_p3 = pneg %p827_p0 }
  0x1a   : > { %p835_p9 = pnand %p834_p10, %p828_p3 }
  0x1c   : > { %838 = shalt.err (!%p835_p9)
}
  0x1d   : > { %s965_s8 = smov 192   ;;  %s966_s9 = smov 12  }
  0x1e   : > { %738 = dma.hbm_to_vmem [thread:$0]  (!%p1053_p11), %s1196_s1, 768, %s176_s28, [#allocation6], %s965_s8, %s965_s8, %s966_s9  }
  0x1f   : > { %s850_s12 = scalar_lea.vmem %s192_s6, 1024  ;;  %p858_p2 = scmp.lt.s32.totalorder %s192_s6, %s192_s6 }
  0x20   : > { %p851_p1 = scmp.ne.s32.totalorder %s192_s6, %s850_s12  ;;  %p859_p6 = scmp.lt.s32.totalorder %s850_s12, %s850_s12 }
  0x22   : > { %p853_p13 = pnand %p851_p1, %p815_p12  ;;  %p860_p5 = por %p859_p6, %p858_p2 }
  0x24   : > { %p854_p0 = pneg %p853_p13 }
  0x26   : > { %p861_p10 = pnand %p860_p5, %p854_p0 }
  0x28   : > { %864 = shalt.err (!%p861_p10)
}
  0x29   : > { %s967_s13 = smov 64   ;;  %s968_s14 = smov 4  }
  0x2a   : > { %741 = dma.hbm_to_vmem [thread:$0]  (!%p1053_p11), %s1198_s3, 1024, %s192_s6, [#allocation6], %s967_s13, %s967_s13, %s968_s14  }
  0x2b   : > { %s1076_s17 = sadd.s32 1, %s961_s21   ;;  %s29_s27 = sadd.s32 1, %s957_s20 }
  0x2c   : > { %s26_s23 = ssub.s32 %s961_s21, %s1076_s17  ;;  %p36_p2 = scmp.ne.s32.totalorder %s957_s20, %s953_s19 }
  0x2d   : > { %p27_p1 = scmp.eq.s32.totalorder %s26_s23, 0  ;;  %p37_p6 = scmp.eq.s32.totalorder %s961_s21, 0 }
  0x2e   : > { %p1209_p3 = scmp.eq.s32.totalorder %s1025_s22, 1  ;;  %p752_p9 = scmp.lt.s32.totalorder %s961_s21, 2 }
  0x2f   : > { %s1085_s28 = scalar_select %p27_p1, %s957_s20, %s29_s27  }
  0x30   : > { %p38_p12 = por %p37_p6, %p36_p2  ;;  %p1089_p7 = por %p1209_p3, %p36_p2 }
  0x31   : > { %s208_s29 = sand.u32 1, %s957_s20   ;;  %s655_s6 = sshll.u32 %s961_s21, 7 }
  0x32   : > { %s1210_s30 = scalar_select %p1089_p7, 1, 0 }
  0x33   : > { %s654_s7 = sshll.u32 %s208_s29, 3  ;;  %s1099_s10 = scalar_lea.hbm %s1195_s0, %s655_s6 }
  0x34   : > { %s212_s11 = scalar_lea.vmem [#allocation2], %s654_s7  ;;  %p1101_p11 = pnand %p752_p9, %p38_p12 }
  0x35   : > { %s219_s12 = sshll.u32 %s212_s11, 4  ;;  %s209_s14 = scalar_lea.sflag [#allocation3], %s208_s29  ;;  %s220_s12 = int_to_ptr.vmem [resolvable:$true] %s219_s12 }
  0x36   : > { %s865_s15 = scalar_lea.hbm %s1099_s10, 128  ;;  %p867_p0 = pneg %p1101_p11 }
  0x37   : > { %p866_p13 = scmp.ne.s32.totalorder %s1099_s10, %s865_s15  ;;  %s870_s27 = scalar_lea.hbm %s1195_s0, 256 }
  0x38   : > { %p871_p1 = scmp.lt.s32.totalorder %s1099_s10, %s1195_s0  ;;  %p872_p2 = scmp.lt.s32.totalorder %s870_s27, %s865_s15 }
  0x39   : > { %p868_p5 = pnand %p867_p0, %p866_p13 }
  0x3a   : > { %p873_p6 = por %p872_p2, %p871_p1 }
  0x3b   : > { %p869_p10 = pneg %p868_p5 }
  0x3d   : > { %p874_p12 = pnand %p873_p6, %p869_p10 }
  0x3f   : > { %877 = shalt.err (!%p874_p12)
}
  0x40   : > { %s878_s8 = scalar_lea.vmem %s220_s12, 128  ;;  %s969_s29 = smov [#allocation2]  }
  0x41   : > { %p879_p3 = scmp.ne.s32.totalorder %s220_s12, %s878_s8  ;;  %s883_s9 = sshll.u32 %s969_s29, 4  ;;  %s884_s9 = int_to_ptr.vmem [resolvable:$false] %s883_s9 }
  0x42   : > { %s885_s11 = scalar_lea.vmem %s884_s9, 256  ;;  %p886_p13 = scmp.lt.s32.totalorder %s220_s12, %s884_s9 }
  0x43   : > { %p881_p9 = pnand %p879_p3, %p867_p0  ;;  %p887_p5 = scmp.lt.s32.totalorder %s885_s11, %s878_s8 }
  0x45   : > { %p882_p7 = pneg %p881_p9  ;;  %p888_p4 = por %p887_p5, %p886_p13 }
  0x47   : > { %p889_p8 = pnand %p888_p4, %p882_p7 }
  0x49   : > { %892 = shalt.err (!%p889_p8)
}
  0x4a   : > { %745 = dma.hbm_to_vmem [thread:$0]  (!%p1101_p11), %s1099_s10, 128, %s220_s12, %s209_s14  }
  0x4b   : > { %p1212_p10 = scmp.ne.s32.totalorder %s1207_s26, 0 }
  0x4c   : > { %s1122_s15 = sand.u32 (!%p1212_p10), 1, %s953_s19   ;;  %p1213_p4 = scmp.ne.s32.totalorder (!%p1212_p10), %s1205_s24, 0 }
  0x4d   : > { %228 = sbr.rel (%p1212_p10) target bundleno = 519 (0x207), region = 40  ;;  %s657_s16 = sshll.u32 (!%p1212_p10), %s1122_s15, 3 }
  0x4e   : > { %s231_s23 = scalar_lea.sflag (!%p1212_p10), [#allocation3], %s1122_s15  ;;  %s234_s27 = scalar_lea.vmem (!%p1212_p10), [#allocation2], %s657_s16 }
  0x52   : > { %936 = dma.done.wait (%p1213_p4), %s231_s23, 128  }
  0x53   : > { %938 = vsyncadd (%p1213_p4), %s231_s23, 4294967168  ;;  %p1214_p8 = scmp.eq.s32.totalorder %s1025_s22, 0 }
  0x55   : > { %940 = dma.done.wait (%p1214_p8), [#allocation6], 1792   ;;  %p1215_p7 = pmov %p1214_p8 }
  0x56   : > { %v970_v0 = vmov 0   ;;  %v971_v1 = vmov 0.0   ;;  %vm972_vm0 = vmmov 0   ;;  %v797_v2 = vld [vmem:[#allocation5 + $0x1c] ss:$12 sps:$4 sm:$0xff]   ;;  %vm312_vm1 = vcmask 261120  }
  0x57   : > { %942 = vsyncadd (%p1215_p7), [#allocation6], 4294965504  ;;  %348 = vmatprep.mubr.bf16.mxu1 %v970_v0  ;;  %703 = vmatprep.subr.bf16.mxu0 %v971_v1  ;;  %v799_v3 = vld [vmem:[#allocation5 + $0x18] ss:$12 sps:$4 sm:$0xff]   ;;  %v802_v5 = vld [vmem:[#allocation5] ss:$12 sps:$4 sm:$0xff]   ;;  %v397_v18 = vlaneseq }
  0x58   : > { %719 = vmatprep.mubr.msk.bf16.mxu0 %vm972_vm0, %v971_v1  ;;  %328 = vmatprep.subr.bf16.mxu1 %v797_v2  ;;  %v800_v4 = vld [vmem:[#allocation5 + $0x4] ss:$12 sps:$4 sm:$0xff]   ;;  %v805_v7 = vld [vmem:[#allocation7 + $0x38] sm:$0xff]   ;;  %v807_v12 = vld [vmem:[#allocation7 + $0x28] sm:$0xff]   ;;  %s680_s13 = sshll.u32 %s1025_s22, 7  ;;  %s268_s14 = scalar_lea.vmem [#allocation8], %s657_s16 }
  0x59   : > { %329 = vmatpush1.bf16.msra.mxu1 %v799_v3  ;;  %v270_v6 = vld [vmem:[%s234_s27] sm:$0xff]  ;;  %v803_v9 = vld [vmem:[#allocation5 + $0x20] ss:$12 sps:$4 sm:$0xff]   ;;  %704 = vmatpush3.bf16.msra.mxu0 %v805_v7  ;;  %v398_v19 = vshrl.u32 %v397_v18, 7  ;;  %s560_s6 = sshll.u32 %s268_s14, 4  ;;  %s1152_s29 = scalar_lea.hbm %s1200_s5, %s680_s13  ;;  %s1154_s6 = int_to_ptr.vmem [resolvable:$true] %s560_s6 }
  0x5a   : > { %330 = vmatprep.subr.bf16.mxu1 %v800_v4  ;;  %v271_v8 = vpack.c.bf16 %v270_v6, %v270_v6  ;;  %v806_v10 = vld [vmem:[#allocation7 + $0x30] sm:$0xff]   ;;  %705 = vmatprep.subr.bf16.mxu0 %v971_v1  ;;  %v804_v11 = vld [vmem:[#allocation5 + $0x8] ss:$12 sps:$4 sm:$0xff]   ;;  %v811_v16 = vld [vmem:[#allocation7 + $0x8] sm:$0xff]   ;;  %s547_s22 = scalar_lea.sflag [#allocation4], %s1122_s15  ;;  %s893_s9 = scalar_lea.vmem %s1154_s6, 128 }
  0x5b   : > { %v808_v13 = vld [vmem:[#allocation7 + $0x20] sm:$0xff]   ;;  %v809_v14 = vld [vmem:[#allocation7 + $0x18] sm:$0xff]   ;;  %v810_v15 = vld [vmem:[#allocation7 + $0x10] sm:$0xff]   ;;  %v403_v21 = vand.u32 7, %v398_v19  ;;  %p894_p11 = scmp.ne.s32.totalorder %s1154_s6, %s893_s9  ;;  %p1216_p0 = scmp.ne.s32.totalorder %s1210_s30, 0 }
  0x5c   : > { %v812_v17 = vld [vmem:[#allocation7] sm:$0xff]   ;;  %s973_s11 = smov [#allocation8]  }
  0x5d   : > { %331 = vmatpush1.bf16.msra.mxu1 %v802_v5  ;;  %706 = vmatpush3.bf16.msra.mxu0 %v806_v10  ;;  %vm411_vm2 = vcmp.ne.s32.totalorder %v403_v21, 0  ;;  %vm412_vm3 = vcmp.ne.s32.totalorder %v403_v21, 7  ;;  %v669_v32 = vld [vmem:[%s1197_s2] ss:$0 sm:$0xff]  ;;  %p895_p1 = pnand %p894_p11, %p1216_p0  ;;  %s897_s16 = sshll.u32 %s973_s11, 4  ;;  %s898_s16 = int_to_ptr.vmem [resolvable:$false] %s897_s16 }
  0x5e   : > { %695 = vmatprep.subr.bf16.mxu1 %v971_v1  ;;  %707 = vmatprep.subr.bf16.mxu0 %v971_v1  ;;  %v670_v39 = vld [vmem:[%s1199_s4] ss:$0 sm:$0xff]  ;;  %s899_s23 = scalar_lea.vmem %s898_s16, 256  ;;  %p900_p6 = scmp.lt.s32.totalorder %s1154_s6, %s898_s16 }
  0x5f   : > { %p896_p2 = pneg %p895_p1  ;;  %p901_p12 = scmp.lt.s32.totalorder %s899_s23, %s893_s9 }
  0x60   : > { %667 = vmatmul.mubr.msk.bf16.vlgmr.msra.gmra.mxu1 %vm312_vm1, %v271_v8 }
  0x61   : > { %696 = vmatpush3.bf16.msra.mxu1 %v803_v9  ;;  %699 = vmatprep.mubr.msk.bf16.mxu1 %vm972_vm0, %v971_v1  ;;  %p902_p3 = por %p901_p12, %p900_p6 }
  0x62   : > { %697 = vmatprep.subr.bf16.mxu1 %v971_v1  ;;  %708 = vmatpush3.bf16.msra.mxu0 %v807_v12 }
  0x63   : > { %709 = vmatprep.subr.bf16.mxu0 %v971_v1  ;;  %p903_p9 = pnand %p902_p3, %p896_p2 }
  0x65   : > { %698 = vmatpush3.bf16.msra.mxu1 %v804_v11 }
  0x66   : > { %710 = vmatpush3.bf16.msra.mxu0 %v808_v13 }
  0x67   : > { %711 = vmatprep.subr.bf16.mxu0 %v971_v1 }
  0x68   : > { %700 = vmatmul.mubr.msk.bf16.vlgmr.msra.gmra.mxu1 %vm312_vm1, %v271_v8 }
  0x6a   : > { %712 = vmatpush3.bf16.msra.mxu0 %v809_v14 }
  0x6b   : > { %713 = vmatprep.subr.bf16.mxu0 %v971_v1 }
  0x6e   : > { %714 = vmatpush3.bf16.msra.mxu0 %v810_v15 }
  0x6f   : > { %715 = vmatprep.subr.bf16.mxu0 %v971_v1 }
  0x72   : > { %716 = vmatpush3.bf16.msra.mxu0 %v811_v16 }
  0x73   : > { %717 = vmatprep.subr.bf16.mxu0 %v971_v1 }
  0x76   : > { %718 = vmatpush3.bf16.msra.mxu0 %v812_v17 }
 0x120   : > { %v350_v20 = vpop.f32.mrf.mxu1 }
 0x121   : > { %v413_v23 = vrot.slane %v350_v20, 7 }
 0x122   : > { %v352_v22 = vpop.f32.mrf.mxu1 }
 0x123   : > { %v416_v26 = vsel %vm411_vm2, %v413_v23, 0.0 }
 0x124   : > { %v354_v24 = vpop.f32.mrf.mxu1  ;;  %v421_v29 = vadd.f32 %v416_v26, %v352_v22 }
 0x126   : > { %v355_v25 = vpop.f32.mrf.mxu1 }
 0x128   : > { %v391_v27 = vpop.f32.mrf.mxu1 }
 0x129   : > { %v417_v28 = vrot.slane %v391_v27, 1 }
 0x12a   : > { %v701_v30 = vpop.f32.mrf.mxu1 }
 0x12b   : > { %v420_v31 = vsel %vm412_vm3, %v417_v28, 0.0 }
 0x12c   : > { %v422_v33 = vadd.f32 %v421_v29, %v420_v31  ;;  %v394_v34 = vpop.f32.mrf.mxu1 }
 0x12e   : > { %v702_v35 = vpop.f32.mrf.mxu1  ;;  %v430_v36 = vadd.f32 %v669_v32, %v422_v33 }
 0x130   : > { %v431_v37 = vmax.f32 %v430_v36, 0.0 }
 0x132   : > { %v432_v38 = vpack.c.bf16 %v431_v37, %v431_v37 }
 0x134   : > { %720 = vmatmul.mubr.bf16.vlgmr.msra.gmra.mxu0 %v432_v38 }
 0x1f4   : > { %v538_v40 = vpop.f32.mrf.mxu0 }
 0x1f5   : > { %v539_v41 = vadd.f32 %v670_v39, %v538_v40 }
 0x1f6   : > { %v721_v42 = vpop.f32.mrf.mxu0 }
 0x1f7   : > { %v544_v43 = vmax.f32 %v539_v41, 0.0 }
 0x1f8   : > { %v541_v44 = vpop.f32.mrf.mxu0 }
 0x1f9   : > { %545 = vst [vmem:[%s268_s14] sm:$0xff] %v544_v43 }
 0x1fa   : > { %v722_v45 = vpop.f32.mrf.mxu0 }
 0x1fb   : > { %906 = shalt.err (!%p903_p9)
}
 0x1fc   : > { %s907_s27 = scalar_lea.hbm %s1152_s29, 128  ;;  %s911_s26 = scalar_lea.hbm %s1200_s5, 256 }
 0x1fd   : > { %p908_p13 = scmp.ne.s32.totalorder %s1152_s29, %s907_s27  ;;  %p912_p4 = scmp.lt.s32.totalorder %s1152_s29, %s1200_s5 }
 0x1fe   : > { %p913_p8 = scmp.lt.s32.totalorder %s911_s26, %s907_s27 }
 0x1ff   : > { %p909_p5 = pnand %p908_p13, %p1216_p0 }
 0x200   : > { %p914_p7 = por %p913_p8, %p912_p4 }
 0x201   : > { %p910_p10 = pneg %p909_p5 }
 0x203   : > { %p915_p11 = pnand %p914_p7, %p910_p10 }
 0x205   : > { %918 = shalt.err (!%p915_p11)
}
 0x206   : > { %733 = dma.vmem_to_hbm [thread:$0]  (%p1216_p0), %s1154_s6, 128, %s1152_s29, %s547_s22  }
 0x207 PF: > { %s572_s13 = sand.u32 1, %s949_s18   ;;  %p1217_p1 = scmp.ne.s32.totalorder %s1206_s25, 0 }
 0x208   : > { %p1218_p2 = scmp.ge.s32.totalorder %s961_s21, 2  ;;  %s573_s14 = scalar_lea.sflag [#allocation4], %s572_s13 }
 0x20a   : > { %p747_p6 = pnand %p1218_p2, %p1217_p1 }
 0x20c   : > { %p748_p12 = pneg %p747_p6 }
 0x20e   : > { %944 = dma.done.wait (%p748_p12), %s573_s14, 128  }
 0x20f   : > { %946 = vsyncadd (%p748_p12), %s573_s14, 4294967168  ;;  %p19_p3 = scmp.ge.s32.totalorder %s1076_s17, 4   ;;  %s1219_s18 = smov %s953_s19 }
 0x210   : > { %s1220_s19 = smov %s957_s20  ;;  %s1221_s20 = smov %s1085_s28 }
 0x211   : > { %s1222_s21 = smov %s1076_s17  ;;  %21 = sbr.rel (!%p19_p3) target bundleno = 6 (0x6), region = 93 }
 0x216   :  { %578 = vsyncpa [#allocation3], 1 }
 0x217   :  { %580 = vsyncpa [#allocation3 + $0x1], 1 }
 0x218   :  { %581 = vsyncpa [#allocation6], 1 }
 0x219   :  { %582 = vsyncpa [#allocation4], 1 }
 0x21a   :  { %584 = vsyncpa [#allocation4 + $0x1], 1 }

// kernel: tpu_custom_call.1
= control target key start
LH: loop header
LB: loop body
LE: loop exit
PB: predicated region body
PF: predicated region fallthrough
CT: control target
= control target key end

     0   :  { %10 = vsyncpa [#allocation3], 0  ;;  %s1195_s0 = inlined_call_operand.hbm [shape: f32[16,32], index: 0, kind: input, shape index: {}]   ;;  %s1196_s1 = inlined_call_operand.hbm [shape: bf16[32,384], index: 1, kind: input, shape index: {}]   ;;  %s1197_s2 = inlined_call_operand.vmem [shape: f32[1,128], index: 2, kind: input, shape index: {}]   ;;  %s1198_s3 = inlined_call_operand.hbm [shape: bf16[128,128], index: 3, kind: input, shape index: {}]   ;;  %s1199_s4 = inlined_call_operand.vmem [shape: f32[1,128], index: 4, kind: input, shape index: {}]   ;;  %s1200_s5 = inlined_call_operand.hbm [shape: f32[16,128], index: 5, kind: output, shape index: {}]  }
   0x1   :  { %12 = vsyncpa [#allocation3 + $0x1], 0 }
   0x2   :  { %13 = vsyncpa [#allocation6], 0 }
   0x3   :  { %14 = vsyncpa [#allocation4], 0 }
   0x4   :  { %16 = vsyncpa [#allocation4 + $0x1], 0  ;;  %s1004_s18 = smov 0   ;;  %s1006_s19 = smov 0  }
   0x5   :  { %s1008_s20 = smov 0   ;;  %s1010_s21 = smov 0  }
   0x6 LB: > { %s1025_s22 = sadd.s32 4294967295, %s961_s21   ;;  %s649_s23 = sadd.s32 4294967294, %s961_s21   ;;  %s961_s21 = sphi %s1010_s21, %s1222_s21   ;;  %s957_s20 = sphi %s1008_s20, %s1221_s20   ;;  %s953_s19 = sphi %s1006_s19, %s1220_s19   ;;  %s949_s18 = sphi %s1004_s18, %s1219_s18  }
   0x7   : > { %p42_p0 = scmp.ne.s32.totalorder %s953_s19, %s949_s18  ;;  %p1201_p1 = scmp.eq.s32.totalorder %s1025_s22, 0 }
   0x8   : > { %p156_p3 = scmp.eq.s32.totalorder %s649_s23, 1  ;;  %p650_p5 = scmp.ge.s32.totalorder %s961_s21, 1 }
   0x9   : > { %p1034_p4 = por %p1201_p1, %p42_p0  ;;  %p163_p7 = scmp.lt.s32.totalorder %s961_s21, 3 }
   0xa   : > { %p1039_p6 = por %p156_p3, %p42_p0  ;;  %s963_s27 = smov [#allocation5]  }
   0xb   : > { %s1205_s24 = scalar_select %p1034_p4, 1, 0 }
   0xc   : > { %s1206_s25 = scalar_select %p1039_p6, 1, 0 }
   0xd   : > { %p1044_p8 = pnand %p650_p5, %p163_p7  ;;  %s175_s28 = sshll.u32 %s963_s27, 4  ;;  %s176_s28 = int_to_ptr.vmem [resolvable:$true] %s175_s28 }
   0xe   : > { %s964_s30 = smov [#allocation7]   ;;  %s824_s7 = scalar_lea.vmem %s176_s28, 768 }
   0xf   : > { %s1207_s26 = scalar_select %p1044_p8, 1, 0 }
  0x10   : > { %p735_p9 = pneg %p1044_p8  ;;  %s191_s6 = sshll.u32 %s964_s30, 4  ;;  %s192_s6 = int_to_ptr.vmem [resolvable:$true] %s191_s6 }
  0x11   : > { %p825_p13 = scmp.ne.s32.totalorder %s176_s28, %s824_s7  ;;  %p832_p5 = scmp.lt.s32.totalorder %s176_s28, %s176_s28 }
  0x12   : > { %p1053_p11 = pnand %p735_p9, %p1201_p1  ;;  %p833_p7 = scmp.lt.s32.totalorder %s824_s7, %s824_s7 }
  0x14   : > { %p815_p12 = pneg %p1053_p11  ;;  %p834_p10 = por %p833_p7, %p832_p5 }
  0x16   : > { %p827_p0 = pnand %p825_p13, %p815_p12 }
  0x18   : > { %p828_p3 = pneg %p827_p0 }
  0x1a   : > { %p835_p9 = pnand %p834_p10, %p828_p3 }
  0x1c   : > { %838 = shalt.err (!%p835_p9)
}
  0x1d   : > { %s965_s8 = smov 192   ;;  %s966_s9 = smov 12  }
  0x1e   : > { %738 = dma.hbm_to_vmem [thread:$0]  (!%p1053_p11), %s1196_s1, 768, %s176_s28, [#allocation6], %s965_s8, %s965_s8, %s966_s9  }
  0x1f   : > { %s850_s12 = scalar_lea.vmem %s192_s6, 1024  ;;  %p858_p2 = scmp.lt.s32.totalorder %s192_s6, %s192_s6 }
  0x20   : > { %p851_p1 = scmp.ne.s32.totalorder %s192_s6, %s850_s12  ;;  %p859_p6 = scmp.lt.s32.totalorder %s850_s12, %s850_s12 }
  0x22   : > { %p853_p13 = pnand %p851_p1, %p815_p12  ;;  %p860_p5 = por %p859_p6, %p858_p2 }
  0x24   : > { %p854_p0 = pneg %p853_p13 }
  0x26   : > { %p861_p10 = pnand %p860_p5, %p854_p0 }
  0x28   : > { %864 = shalt.err (!%p861_p10)
}
  0x29   : > { %s967_s13 = smov 64   ;;  %s968_s14 = smov 4  }
  0x2a   : > { %741 = dma.hbm_to_vmem [thread:$0]  (!%p1053_p11), %s1198_s3, 1024, %s192_s6, [#allocation6], %s967_s13, %s967_s13, %s968_s14  }
  0x2b   : > { %s1076_s17 = sadd.s32 1, %s961_s21   ;;  %s29_s27 = sadd.s32 1, %s957_s20 }
  0x2c   : > { %s26_s23 = ssub.s32 %s961_s21, %s1076_s17  ;;  %p36_p2 = scmp.ne.s32.totalorder %s957_s20, %s953_s19 }
  0x2d   : > { %p27_p1 = scmp.eq.s32.totalorder %s26_s23, 0  ;;  %p37_p6 = scmp.eq.s32.totalorder %s961_s21, 0 }
  0x2e   : > { %p1209_p3 = scmp.eq.s32.totalorder %s1025_s22, 1  ;;  %p752_p9 = scmp.lt.s32.totalorder %s961_s21, 2 }
  0x2f   : > { %s1085_s28 = scalar_select %p27_p1, %s957_s20, %s29_s27  }
  0x30   : > { %p38_p12 = por %p37_p6, %p36_p2  ;;  %p1089_p7 = por %p1209_p3, %p36_p2 }
  0x31   : > { %s208_s29 = sand.u32 1, %s957_s20   ;;  %s655_s6 = sshll.u32 %s961_s21, 7 }
  0x32   : > { %s1210_s30 = scalar_select %p1089_p7, 1, 0 }
  0x33   : > { %s654_s7 = sshll.u32 %s208_s29, 3  ;;  %s1099_s10 = scalar_lea.hbm %s1195_s0, %s655_s6 }
  0x34   : > { %s212_s11 = scalar_lea.vmem [#allocation2], %s654_s7  ;;  %p1101_p11 = pnand %p752_p9, %p38_p12 }
  0x35   : > { %s219_s12 = sshll.u32 %s212_s11, 4  ;;  %s209_s14 = scalar_lea.sflag [#allocation3], %s208_s29  ;;  %s220_s12 = int_to_ptr.vmem [resolvable:$true] %s219_s12 }
  0x36   : > { %s865_s15 = scalar_lea.hbm %s1099_s10, 128  ;;  %p867_p0 = pneg %p1101_p11 }
  0x37   : > { %p866_p13 = scmp.ne.s32.totalorder %s1099_s10, %s865_s15  ;;  %s870_s27 = scalar_lea.hbm %s1195_s0, 256 }
  0x38   : > { %p871_p1 = scmp.lt.s32.totalorder %s1099_s10, %s1195_s0  ;;  %p872_p2 = scmp.lt.s32.totalorder %s870_s27, %s865_s15 }
  0x39   : > { %p868_p5 = pnand %p867_p0, %p866_p13 }
  0x3a   : > { %p873_p6 = por %p872_p2, %p871_p1 }
  0x3b   : > { %p869_p10 = pneg %p868_p5 }
  0x3d   : > { %p874_p12 = pnand %p873_p6, %p869_p10 }
  0x3f   : > { %877 = shalt.err (!%p874_p12)
}
  0x40   : > { %s878_s8 = scalar_lea.vmem %s220_s12, 128  ;;  %s969_s29 = smov [#allocation2]  }
  0x41   : > { %p879_p3 = scmp.ne.s32.totalorder %s220_s12, %s878_s8  ;;  %s883_s9 = sshll.u32 %s969_s29, 4  ;;  %s884_s9 = int_to_ptr.vmem [resolvable:$false] %s883_s9 }
  0x42   : > { %s885_s11 = scalar_lea.vmem %s884_s9, 256  ;;  %p886_p13 = scmp.lt.s32.totalorder %s220_s12, %s884_s9 }
  0x43   : > { %p881_p9 = pnand %p879_p3, %p867_p0  ;;  %p887_p5 = scmp.lt.s32.totalorder %s885_s11, %s878_s8 }
  0x45   : > { %p882_p7 = pneg %p881_p9  ;;  %p888_p4 = por %p887_p5, %p886_p13 }
  0x47   : > { %p889_p8 = pnand %p888_p4, %p882_p7 }
  0x49   : > { %892 = shalt.err (!%p889_p8)
}
  0x4a   : > { %745 = dma.hbm_to_vmem [thread:$0]  (!%p1101_p11), %s1099_s10, 128, %s220_s12, %s209_s14  }
  0x4b   : > { %p1212_p10 = scmp.ne.s32.totalorder %s1207_s26, 0 }
  0x4c   : > { %s1122_s15 = sand.u32 (!%p1212_p10), 1, %s953_s19   ;;  %p1213_p4 = scmp.ne.s32.totalorder (!%p1212_p10), %s1205_s24, 0 }
  0x4d   : > { %228 = sbr.rel (%p1212_p10) target bundleno = 519 (0x207), region = 40  ;;  %s657_s16 = sshll.u32 (!%p1212_p10), %s1122_s15, 3 }
  0x4e   : > { %s231_s23 = scalar_lea.sflag (!%p1212_p10), [#allocation3], %s1122_s15  ;;  %s234_s27 = scalar_lea.vmem (!%p1212_p10), [#allocation2], %s657_s16 }
  0x52   : > { %936 = dma.done.wait (%p1213_p4), %s231_s23, 128  }
  0x53   : > { %938 = vsyncadd (%p1213_p4), %s231_s23, 4294967168  ;;  %p1214_p8 = scmp.eq.s32.totalorder %s1025_s22, 0 }
  0x55   : > { %940 = dma.done.wait (%p1214_p8), [#allocation6], 1792   ;;  %p1215_p7 = pmov %p1214_p8 }
  0x56   : > { %v970_v0 = vmov 0   ;;  %v971_v1 = vmov 0.0   ;;  %vm972_vm0 = vmmov 0   ;;  %v797_v2 = vld [vmem:[#allocation5 + $0x1c] ss:$12 sps:$4 sm:$0xff]   ;;  %vm312_vm1 = vcmask 261120  }
  0x57   : > { %942 = vsyncadd (%p1215_p7), [#allocation6], 4294965504  ;;  %348 = vmatprep.mubr.bf16.mxu1 %v970_v0  ;;  %703 = vmatprep.subr.bf16.mxu0 %v971_v1  ;;  %v799_v3 = vld [vmem:[#allocation5 + $0x18] ss:$12 sps:$4 sm:$0xff]   ;;  %v802_v5 = vld [vmem:[#allocation5] ss:$12 sps:$4 sm:$0xff]   ;;  %v397_v18 = vlaneseq }
  0x58   : > { %719 = vmatprep.mubr.msk.bf16.mxu0 %vm972_vm0, %v971_v1  ;;  %328 = vmatprep.subr.bf16.mxu1 %v797_v2  ;;  %v800_v4 = vld [vmem:[#allocation5 + $0x4] ss:$12 sps:$4 sm:$0xff]   ;;  %v805_v7 = vld [vmem:[#allocation7 + $0x38] sm:$0xff]   ;;  %v807_v12 = vld [vmem:[#allocation7 + $0x28] sm:$0xff]   ;;  %s680_s13 = sshll.u32 %s1025_s22, 7  ;;  %s268_s14 = scalar_lea.vmem [#allocation8], %s657_s16 }
  0x59   : > { %329 = vmatpush1.bf16.msra.mxu1 %v799_v3  ;;  %v270_v6 = vld [vmem:[%s234_s27] sm:$0xff]  ;;  %v803_v9 = vld [vmem:[#allocation5 + $0x20] ss:$12 sps:$4 sm:$0xff]   ;;  %704 = vmatpush3.bf16.msra.mxu0 %v805_v7  ;;  %v398_v19 = vshrl.u32 %v397_v18, 7  ;;  %s560_s6 = sshll.u32 %s268_s14, 4  ;;  %s1152_s29 = scalar_lea.hbm %s1200_s5, %s680_s13  ;;  %s1154_s6 = int_to_ptr.vmem [resolvable:$true] %s560_s6 }
  0x5a   : > { %330 = vmatprep.subr.bf16.mxu1 %v800_v4  ;;  %v271_v8 = vpack.c.bf16 %v270_v6, %v270_v6  ;;  %v806_v10 = vld [vmem:[#allocation7 + $0x30] sm:$0xff]   ;;  %705 = vmatprep.subr.bf16.mxu0 %v971_v1  ;;  %v804_v11 = vld [vmem:[#allocation5 + $0x8] ss:$12 sps:$4 sm:$0xff]   ;;  %v811_v16 = vld [vmem:[#allocation7 + $0x8] sm:$0xff]   ;;  %s547_s22 = scalar_lea.sflag [#allocation4], %s1122_s15  ;;  %s893_s9 = scalar_lea.vmem %s1154_s6, 128 }
  0x5b   : > { %v808_v13 = vld [vmem:[#allocation7 + $0x20] sm:$0xff]   ;;  %v809_v14 = vld [vmem:[#allocation7 + $0x18] sm:$0xff]   ;;  %v810_v15 = vld [vmem:[#allocation7 + $0x10] sm:$0xff]   ;;  %v403_v21 = vand.u32 7, %v398_v19  ;;  %p894_p11 = scmp.ne.s32.totalorder %s1154_s6, %s893_s9  ;;  %p1216_p0 = scmp.ne.s32.totalorder %s1210_s30, 0 }
  0x5c   : > { %v812_v17 = vld [vmem:[#allocation7] sm:$0xff]   ;;  %s973_s11 = smov [#allocation8]  }
  0x5d   : > { %331 = vmatpush1.bf16.msra.mxu1 %v802_v5  ;;  %706 = vmatpush3.bf16.msra.mxu0 %v806_v10  ;;  %vm411_vm2 = vcmp.ne.s32.totalorder %v403_v21, 0  ;;  %vm412_vm3 = vcmp.ne.s32.totalorder %v403_v21, 7  ;;  %v669_v32 = vld [vmem:[%s1197_s2] ss:$0 sm:$0xff]  ;;  %p895_p1 = pnand %p894_p11, %p1216_p0  ;;  %s897_s16 = sshll.u32 %s973_s11, 4  ;;  %s898_s16 = int_to_ptr.vmem [resolvable:$false] %s897_s16 }
  0x5e   : > { %695 = vmatprep.subr.bf16.mxu1 %v971_v1  ;;  %707 = vmatprep.subr.bf16.mxu0 %v971_v1  ;;  %v670_v39 = vld [vmem:[%s1199_s4] ss:$0 sm:$0xff]  ;;  %s899_s23 = scalar_lea.vmem %s898_s16, 256  ;;  %p900_p6 = scmp.lt.s32.totalorder %s1154_s6, %s898_s16 }
  0x5f   : > { %p896_p2 = pneg %p895_p1  ;;  %p901_p12 = scmp.lt.s32.totalorder %s899_s23, %s893_s9 }
  0x60   : > { %667 = vmatmul.mubr.msk.bf16.vlgmr.msra.gmra.mxu1 %vm312_vm1, %v271_v8 }
  0x61   : > { %696 = vmatpush3.bf16.msra.mxu1 %v803_v9  ;;  %699 = vmatprep.mubr.msk.bf16.mxu1 %vm972_vm0, %v971_v1  ;;  %p902_p3 = por %p901_p12, %p900_p6 }
  0x62   : > { %697 = vmatprep.subr.bf16.mxu1 %v971_v1  ;;  %708 = vmatpush3.bf16.msra.mxu0 %v807_v12 }
  0x63   : > { %709 = vmatprep.subr.bf16.mxu0 %v971_v1  ;;  %p903_p9 = pnand %p902_p3, %p896_p2 }
  0x65   : > { %698 = vmatpush3.bf16.msra.mxu1 %v804_v11 }
  0x66   : > { %710 = vmatpush3.bf16.msra.mxu0 %v808_v13 }
  0x67   : > { %711 = vmatprep.subr.bf16.mxu0 %v971_v1 }
  0x68   : > { %700 = vmatmul.mubr.msk.bf16.vlgmr.msra.gmra.mxu1 %vm312_vm1, %v271_v8 }
  0x6a   : > { %712 = vmatpush3.bf16.msra.mxu0 %v809_v14 }
  0x6b   : > { %713 = vmatprep.subr.bf16.mxu0 %v971_v1 }
  0x6e   : > { %714 = vmatpush3.bf16.msra.mxu0 %v810_v15 }
  0x6f   : > { %715 = vmatprep.subr.bf16.mxu0 %v971_v1 }
  0x72   : > { %716 = vmatpush3.bf16.msra.mxu0 %v811_v16 }
  0x73   : > { %717 = vmatprep.subr.bf16.mxu0 %v971_v1 }
  0x76   : > { %718 = vmatpush3.bf16.msra.mxu0 %v812_v17 }
 0x120   : > { %v350_v20 = vpop.f32.mrf.mxu1 }
 0x121   : > { %v413_v23 = vrot.slane %v350_v20, 7 }
 0x122   : > { %v352_v22 = vpop.f32.mrf.mxu1 }
 0x123   : > { %v416_v26 = vsel %vm411_vm2, %v413_v23, 0.0 }
 0x124   : > { %v354_v24 = vpop.f32.mrf.mxu1  ;;  %v421_v29 = vadd.f32 %v416_v26, %v352_v22 }
 0x126   : > { %v355_v25 = vpop.f32.mrf.mxu1 }
 0x128   : > { %v391_v27 = vpop.f32.mrf.mxu1 }
 0x129   : > { %v417_v28 = vrot.slane %v391_v27, 1 }
 0x12a   : > { %v701_v30 = vpop.f32.mrf.mxu1 }
 0x12b   : > { %v420_v31 = vsel %vm412_vm3, %v417_v28, 0.0 }
 0x12c   : > { %v422_v33 = vadd.f32 %v421_v29, %v420_v31  ;;  %v394_v34 = vpop.f32.mrf.mxu1 }
 0x12e   : > { %v702_v35 = vpop.f32.mrf.mxu1  ;;  %v430_v36 = vadd.f32 %v669_v32, %v422_v33 }
 0x130   : > { %v431_v37 = vmax.f32 %v430_v36, 0.0 }
 0x132   : > { %v432_v38 = vpack.c.bf16 %v431_v37, %v431_v37 }
 0x134   : > { %720 = vmatmul.mubr.bf16.vlgmr.msra.gmra.mxu0 %v432_v38 }
 0x1f4   : > { %v538_v40 = vpop.f32.mrf.mxu0 }
 0x1f5   : > { %v539_v41 = vadd.f32 %v670_v39, %v538_v40 }
 0x1f6   : > { %v721_v42 = vpop.f32.mrf.mxu0 }
 0x1f7   : > { %v544_v43 = vmax.f32 %v539_v41, 0.0 }
 0x1f8   : > { %v541_v44 = vpop.f32.mrf.mxu0 }
 0x1f9   : > { %545 = vst [vmem:[%s268_s14] sm:$0xff] %v544_v43 }
 0x1fa   : > { %v722_v45 = vpop.f32.mrf.mxu0 }
 0x1fb   : > { %906 = shalt.err (!%p903_p9)
}
 0x1fc   : > { %s907_s27 = scalar_lea.hbm %s1152_s29, 128  ;;  %s911_s26 = scalar_lea.hbm %s1200_s5, 256 }
 0x1fd   : > { %p908_p13 = scmp.ne.s32.totalorder %s1152_s29, %s907_s27  ;;  %p912_p4 = scmp.lt.s32.totalorder %s1152_s29, %s1200_s5 }
 0x1fe   : > { %p913_p8 = scmp.lt.s32.totalorder %s911_s26, %s907_s27 }
 0x1ff   : > { %p909_p5 = pnand %p908_p13, %p1216_p0 }
 0x200   : > { %p914_p7 = por %p913_p8, %p912_p4 }
 0x201   : > { %p910_p10 = pneg %p909_p5 }
 0x203   : > { %p915_p11 = pnand %p914_p7, %p910_p10 }
 0x205   : > { %918 = shalt.err (!%p915_p11)
}
 0x206   : > { %733 = dma.vmem_to_hbm [thread:$0]  (%p1216_p0), %s1154_s6, 128, %s1152_s29, %s547_s22  }
 0x207 PF: > { %s572_s13 = sand.u32 1, %s949_s18   ;;  %p1217_p1 = scmp.ne.s32.totalorder %s1206_s25, 0 }
 0x208   : > { %p1218_p2 = scmp.ge.s32.totalorder %s961_s21, 2  ;;  %s573_s14 = scalar_lea.sflag [#allocation4], %s572_s13 }
 0x20a   : > { %p747_p6 = pnand %p1218_p2, %p1217_p1 }
 0x20c   : > { %p748_p12 = pneg %p747_p6 }
 0x20e   : > { %944 = dma.done.wait (%p748_p12), %s573_s14, 128  }
 0x20f   : > { %946 = vsyncadd (%p748_p12), %s573_s14, 4294967168  ;;  %p19_p3 = scmp.ge.s32.totalorder %s1076_s17, 4   ;;  %s1219_s18 = smov %s953_s19 }
 0x210   : > { %s1220_s19 = smov %s957_s20  ;;  %s1221_s20 = smov %s1085_s28 }
 0x211   : > { %s1222_s21 = smov %s1076_s17  ;;  %21 = sbr.rel (!%p19_p3) target bundleno = 6 (0x6), region = 93 }
 0x216   :  { %578 = vsyncpa [#allocation3], 1 }
 0x217   :  { %580 = vsyncpa [#allocation3 + $0x1], 1 }
 0x218   :  { %581 = vsyncpa [#allocation6], 1 }
 0x219   :  { %582 = vsyncpa [#allocation4], 1 }
 0x21a   :  { %584 = vsyncpa [#allocation4 + $0x1], 1 }

</bundles_post_ra>
